<compile_context>
chip_gen: v7x
topology: tpu7x:2x2x1
jax: 0.10.0
libtpu: 0.0.40
codegen_flags: <defaults>
</compile_context>

<pallas_src>
import functools

import jax
import jax.numpy as jnp
import numpy as np
from jax.experimental import pallas as pl
from jax.experimental.pallas import tpu as pltpu


def _causal_mask_kernel(qblk_ref, kblk_ref, x_ref, o_ref, *, tq, tk, neg_fill):
    """x_ref / o_ref: (NB, TQ, TK) VMEM tile; qblk/kblk: SMEM block coords."""
    s = pl.program_id(1)                     # position in the selected-block list
    row0 = qblk_ref[s] * tq                  # global query row of this tile
    col0 = kblk_ref[s] * tk                  # global key column of this tile
    # Single 2-D predicate, broadcast over the folded batch*head axis.
    row = row0 + jax.lax.broadcasted_iota(jnp.int32, (tq, tk), 0)
    col = col0 + jax.lax.broadcasted_iota(jnp.int32, (tq, tk), 1)
    keep = (col <= row)[None, :, :]
    x = x_ref[...]
    # Select (masked_fill semantics): matches `scores + tril(0/-inf)` for
    # finite scores, with no extra full-size temporary.
    o_ref[...] = jnp.where(keep, x, jnp.asarray(neg_fill, x.dtype))


def _choose_tiles(bh: int, t: int, itemsize: int):
    """Pick (NB, TQ, TK).

    Full-extent tiles for T <= 512 (always a legal block shape); otherwise
    512x512 (512 is a multiple of 128 lanes and of every sublane packing:
    8 for f32, 16 for bf16, 32 for int8/fp8).  NB folds several (TQ, TK)
    planes per block for tiny T but is capped so the BH grid axis keeps at
    least 2 blocks (v7x megacore sharding).
    """
    if t <= 512:
        tq = tk = t
    else:
        tq = tk = 512
    budget = 2 * 1024 * 1024                 # bytes/block; 2 specs x 2 bufs = 8 MiB
    plane_bytes = tq * tk * itemsize
    nb = max(1, min(bh, budget // max(plane_bytes, 1)))
    if bh > 1:
        nb = min(nb, max(1, bh // 2))        # keep >= 2 blocks on the BH axis
    return nb, tq, tk


def _select_blocks(t: int, tq: int, tk: int):
    """(q, k) block coords containing at least one masked (col > row) element.

    Blocks entirely at/below the diagonal are skipped: the output aliases the
    input, so their contents are already correct without any read/write.
    """
    gq, gk = pl.cdiv(t, tq), pl.cdiv(t, tk)
    q_sel, k_sel = [], []
    for qi in range(gq):
        min_row = qi * tq
        for ki in range(gk):
            max_col = min(ki * tk + tk, t) - 1
            if max_col > min_row:
                q_sel.append(qi)
                k_sel.append(ki)
    return np.asarray(q_sel, np.int32), np.asarray(k_sel, np.int32)


def _neg_fill(dtype) -> float:
    """-inf, or the finite dtype minimum for dtypes with no inf (fp8 e4m3)."""
    dt = np.dtype(dtype)
    try:
        if np.isinf(np.float64(np.asarray(float("-inf")).astype(dt))):
            return float("-inf")
    except (OverflowError, ValueError):
        pass
    return float(np.finfo(dt).min)


def causal_mask(attn_scores: jnp.ndarray) -> jnp.ndarray:
    """Causally mask [B, H, T, T] attention scores (== scores + tril(0/-inf)).

    WARNING: the Pallas output aliases its input buffer; do not reuse
    `attn_scores` after this call when running under jit with donation.
    """
    B, H, T, T2 = attn_scores.shape
    assert T == T2, "attn_scores must be [B, H, T, T]"
    BH = B * H
    itemsize = np.dtype(attn_scores.dtype).itemsize

    nb, tq, tk = _choose_tiles(BH, T, itemsize)
    q_sel, k_sel = _select_blocks(T, tq, tk)
    if q_sel.size == 0:                      # T == 1: nothing is ever masked
        return attn_scores

    x = attn_scores.reshape(BH, T, T)
    grid = (pl.cdiv(BH, nb), int(q_sel.size))

    kernel = functools.partial(
        _causal_mask_kernel, tq=tq, tk=tk, neg_fill=_neg_fill(attn_scores.dtype))

    block = pl.BlockSpec(
        (nb, tq, tk), lambda b, s, qblk, kblk: (b, qblk[s], kblk[s]))

    out = pl.pallas_call(
        kernel,
        out_shape=jax.ShapeDtypeStruct((BH, T, T), attn_scores.dtype),
        grid_spec=pltpu.PrefetchScalarGridSpec(
            num_scalar_prefetch=2,
            grid=grid,
            in_specs=[block],
            out_specs=block,
        ),
        # Output aliases the scores operand (arg index 2: after the two
        # scalar-prefetch operands).  Required so culled (never-visited)
        # blocks keep the original scores.
        input_output_aliases={2: 0},
        compiler_params=pltpu.CompilerParams(
            dimension_semantics=("parallel", "arbitrary"),
        ),
    )(jnp.asarray(q_sel), jnp.asarray(k_sel), x)

    return out.reshape(B, H, T, T)


if __name__ == "__main__":
    def reference(scores):
        t = scores.shape[-1]
        row = jnp.arange(t)[:, None]
        col = jnp.arange(t)[None, :]
        mask = jnp.where(col <= row, 0.0, -jnp.inf).astype(scores.dtype)
        return scores + mask[None, None, :, :]

    key = jax.random.PRNGKey(0)

    # Small demo shape matching the module's [B, H, T, T] contract.
    B, H, T = 2, 4, 8
    attn_scores = jax.random.normal(key, (B, H, T, T), dtype=jnp.float32)
    ref = reference(attn_scores)             # computed before the (aliasing) kernel
    out = jax.block_until_ready(causal_mask(attn_scores))
    assert out.shape == attn_scores.shape and out.dtype == attn_scores.dtype
    assert jnp.array_equal(out, ref), "mismatch vs reference (small shape)"

    # Shape that exercises query/key tiling, block culling and the
    # aliasing-preserved (never-visited) below-diagonal blocks.
    T2 = 640
    scores2 = jax.random.normal(jax.random.PRNGKey(1), (1, 1, T2, T2),
                                dtype=jnp.float32)
    ref2 = reference(scores2)
    out2 = jax.block_until_ready(causal_mask(scores2))
    assert jnp.array_equal(out2, ref2), "mismatch vs reference (tiled shape)"

    print("KERNEL_OK")
</pallas_src>

<mosaic_0001>
module attributes {stable_mosaic.version = 11 : i64} {
  func.func @_causal_mask_kernel(%arg0: i32, %arg1: i32, %arg2: memref<1xi32, #tpu.memory_space<smem>>, %arg3: memref<1xi32, #tpu.memory_space<smem>>, %arg4: memref<4x8x8xf32, #tpu.memory_space<vmem>>, %arg5: memref<4x8x8xf32, #tpu.memory_space<vmem>>) attributes {dimension_semantics = [#tpu.dimension_semantics<parallel>, #tpu.dimension_semantics<arbitrary>], iteration_bounds = array<i64: 2, 1>, scalar_prefetch = 2 : i64, scratch_operands = 0 : i64, tpu.core_type = #tpu.core_type<tc>, window_params = [{transform_indices = @transform_0, window_bounds = array<i64: 4, 8, 8>}, {transform_indices = @transform_1, window_bounds = array<i64: 4, 8, 8>}]} {
    %0 = arith.index_cast %arg1 : i32 to index
    %1 = memref.load %arg2[%0] : memref<1xi32, #tpu.memory_space<smem>>
    %c8_i32 = arith.constant 8 : i32
    %2 = arith.muli %1, %c8_i32 : i32
    %3 = arith.index_cast %arg1 : i32 to index
    %4 = memref.load %arg3[%3] : memref<1xi32, #tpu.memory_space<smem>>
    %c8_i32_0 = arith.constant 8 : i32
    %5 = arith.muli %4, %c8_i32_0 : i32
    %6 = tpu.iota {dimensions = array<i32: 0>} : vector<8x8xi32>
    %7 = vector.broadcast %2 : i32 to vector<8x8xi32>
    %8 = arith.addi %7, %6 : vector<8x8xi32>
    %9 = tpu.iota {dimensions = array<i32: 1>} : vector<8x8xi32>
    %10 = vector.broadcast %5 : i32 to vector<8x8xi32>
    %11 = arith.addi %10, %9 : vector<8x8xi32>
    %12 = arith.cmpi sle, %11, %8 : vector<8x8xi32>
    %13 = vector.shape_cast %12 : vector<8x8xi1> to vector<1x8x8xi1>
    %c0 = arith.constant 0 : index
    %c0_1 = arith.constant 0 : index
    %c0_2 = arith.constant 0 : index
    %14 = vector.load %arg4[%c0, %c0_1, %c0_2] : memref<4x8x8xf32, #tpu.memory_space<vmem>>, vector<4x8x8xf32>
    %cst = arith.constant 0xFF800000 : f32
    %15 = vector.shape_cast %13 : vector<1x8x8xi1> to vector<1x8x8xi1>
    %16 = vector.broadcast %15 : vector<1x8x8xi1> to vector<4x8x8xi1>
    %17 = vector.broadcast %cst : f32 to vector<4x8x8xf32>
    %18 = arith.select %16, %14, %17 : vector<4x8x8xi1>, vector<4x8x8xf32>
    %c0_3 = arith.constant 0 : index
    %c0_4 = arith.constant 0 : index
    %c0_5 = arith.constant 0 : index
    %19 = vector.load %arg5[%c0_3, %c0_4, %c0_5] : memref<4x8x8xf32, #tpu.memory_space<vmem>>, vector<4x8x8xf32>
    tpu.vector_store %arg5[%c0_3, %c0_4, %c0_5], %18 {strides = array<i32>} : memref<4x8x8xf32, #tpu.memory_space<vmem>>, vector<4x8x8xf32>,
    return
  }
  func.func @transform_0(%arg0: i32, %arg1: i32, %arg2: memref<1xi32, #tpu.memory_space<smem>>, %arg3: memref<1xi32, #tpu.memory_space<smem>>) -> (i32, i32, i32) {
    %0 = arith.index_cast %arg1 : i32 to index
    %1 = memref.load %arg2[%0] : memref<1xi32, #tpu.memory_space<smem>>
    %2 = arith.index_cast %arg1 : i32 to index
    %3 = memref.load %arg3[%2] : memref<1xi32, #tpu.memory_space<smem>>
    %c0_i32 = arith.constant 0 : i32
    return %arg0, %1, %3 : i32, i32, i32
  }
  func.func @transform_1(%arg0: i32, %arg1: i32, %arg2: memref<1xi32, #tpu.memory_space<smem>>, %arg3: memref<1xi32, #tpu.memory_space<smem>>) -> (i32, i32, i32) {
    %0 = arith.index_cast %arg1 : i32 to index
    %1 = memref.load %arg2[%0] : memref<1xi32, #tpu.memory_space<smem>>
    %2 = arith.index_cast %arg1 : i32 to index
    %3 = memref.load %arg3[%2] : memref<1xi32, #tpu.memory_space<smem>>
    %c0_i32 = arith.constant 0 : i32
    return %arg0, %1, %3 : i32, i32, i32
  }
}

</mosaic_0001>

<bundles_post_ra>
// kernel: tpu_custom_call.1
= control target key start
LH: loop header
LB: loop body
LE: loop exit
PB: predicated region body
PF: predicated region fallthrough
CT: control target
= control target key end

     0   :  { %s795_s0 = inlined_call_operand.<no memory space> [shape: s32[1], index: 0, kind: input, shape index: {}]   ;;  %s796_s1 = inlined_call_operand.<no memory space> [shape: s32[1], index: 1, kind: input, shape index: {}]   ;;  %s797_s2 = inlined_call_operand.hbm [shape: f32[8,8,8], index: 2, kind: input, shape index: {}, may-alias: {2,3}]   ;;  %s798_s3 = inlined_call_operand.hbm [shape: f32[8,8,8], index: 3, kind: output, shape index: {}, may-alias: {2,3}]  }
   0x1   :  { %8 = sst [smem:[#allocation3]] %s795_s0 }
   0x2   :  { %9 = sst [smem:[#allocation4]] %s796_s1 }
   0x3   :  { %10 = vsyncpa [#allocation6], 0 }
   0x4   :  { %12 = vsyncpa [#allocation6 + $0x1], 0 }
   0x5   :  { %13 = vsyncpa [#allocation7], 0 }
   0x6   :  { %15 = vsyncpa [#allocation7 + $0x1], 0  ;;  %s587_s16 = smov 0   ;;  %s589_s17 = smov 0  }
   0x7   :  { %s591_s18 = smov 0   ;;  %s593_s19 = smov 0  }
   0x8   :  { %s595_s20 = smov 0   ;;  %s597_s21 = smov 0  }
   0x9   :  { %s599_s0 = smov 0   ;;  %s601_s22 = smov 0  }
   0xa   :  { %s603_s1 = smov 0  }
   0xb LB: > { %s310_s23 = sadd.s32 4294967295, %s553_s1   ;;  %s311_s24 = sadd.s32 4294967294, %s553_s1   ;;  %s553_s1 = sphi %s603_s1, %s21_s1   ;;  %s549_s22 = sphi %s601_s22, %s816_s22   ;;  %s545_s0 = sphi %s599_s0, %s815_s0   ;;  %s541_s21 = sphi %s597_s21, %s814_s21   ;;  %s537_s20 = sphi %s595_s20, %s813_s20   ;;  %s533_s19 = sphi %s593_s19, %s812_s19   ;;  %s529_s18 = sphi %s591_s18, %s811_s18   ;;  %s525_s17 = sphi %s589_s17, %s810_s17   ;;  %s521_s16 = sphi %s587_s16, %s809_s16  }
   0xc   : > { %s33_s25 = sadd.s32 1, %s549_s22  ;;  %s633_s26 = sld [smem:[#allocation3]] }
   0xd   : > { %p35_p0 = scmp.ge.s32.totalorder %s33_s25, 2  ;;  %s38_s27 = sld [smem:[#allocation4]] }
   0xe   : > { %s48_s28 = sadd.s32 1, %s541_s21  ;;  %p55_p1 = scmp.ne.s32.totalorder %s541_s21, %s537_s20 }
   0xf   : > { %s818_s25 = smov (%p35_p0, %s33_s25), 0  ;;  %p56_p2 = scmp.eq.s32.totalorder %s553_s1, 0 }
  0x10   : > { %p61_p3 = scmp.ne.s32.totalorder %s537_s20, %s533_s19  ;;  %s41_s29 = ssub.s32 %s549_s22, %s818_s25 }
  0x11   : > { %p62_p4 = scmp.eq.s32.totalorder %s310_s23, 0  ;;  %p644_p5 = por %p56_p2, %p55_p1 }
  0x12   : > { %p46_p7 = scmp.eq.s32.totalorder %s41_s29, 0  ;;  %s82_s5 = sadd.s32 1, %s529_s18 }
  0x13   : > { %p648_p6 = por %p62_p4, %p61_p3  ;;  %p92_p8 = scmp.ne.s32.totalorder %s529_s18, %s525_s17 }
  0x14   : > { %p93_p9 = scmp.eq.s32.totalorder %s310_s23, 1  ;;  %p98_p11 = scmp.ne.s32.totalorder %s525_s17, %s521_s16 }
  0x15   : > { %s656_s6 = scalar_select %p46_p7, %s541_s21, %s48_s28  }
  0x16   : > { %s659_s7 = scalar_select %p46_p7, %s529_s18, %s82_s5  }
  0x17   : > { %p661_p10 = por %p93_p9, %p92_p8  ;;  %p99_p12 = scmp.eq.s32.totalorder %s311_s24, 1 }
  0x18   : > { %p339_p0 = scmp.lt.s32.totalorder %s553_s1, 2  ;;  %s119_s9 = sand.u32 1, %s541_s21  }
  0x19   : > { %s802_s8 = scalar_select %p661_p10, 1, 0 }
  0x1a   : > { %p670_p1 = por %p99_p12, %p98_p11  ;;  %s314_s11 = sshll.u32 %s119_s9, 5 }
  0x1b   : > { %s315_s12 = sshll.u32 %s549_s22, 2  ;;  %s130_s13 = sadd.s32 %s38_s27, %s633_s26 }
  0x1c   : > { %s803_s10 = scalar_select %p670_p1, 1, 0 }
  0x1d   : > { %s131_s14 = sadd.s32 %s315_s12, %s130_s13  ;;  %s123_s15 = scalar_lea.vmem [#allocation5], %s314_s11 }
  0x1e   : > { %s134_s19 = sshll.u32 %s123_s15, 4  ;;  %s316_s23 = sshll.u32 %s131_s14, 7  ;;  %s676_s19 = int_to_ptr.vmem [resolvable:$true] %s134_s19 }
  0x1f   : > { %s681_s24 = scalar_lea.hbm %s797_s2, %s316_s23  ;;  %p685_p2 = pnand %p339_p0, %p644_p5 }
  0x20   : > { %s690_s26 = scalar_lea.sflag [#allocation6], %s119_s9  ;;  %s417_s27 = scalar_lea.hbm %s681_s24, 512 }
  0x21   : > { %p418_p4 = scmp.ne.s32.totalorder %s681_s24, %s417_s27  ;;  %p419_p7 = pneg %p685_p2 }
  0x22   : > { %s422_s12 = scalar_lea.hbm %s797_s2, 1024  ;;  %p423_p5 = scmp.lt.u32.totalorder %s681_s24, %s797_s2 }
  0x23   : > { %p420_p8 = pnand %p419_p7, %p418_p4  ;;  %p424_p11 = scmp.lt.u32.totalorder %s422_s12, %s417_s27 }
  0x24   : > { %p426_p0 = scmp.lt.u32.totalorder %s417_s27, %s681_s24 }
  0x25   : > { %p421_p9 = pneg %p420_p8  ;;  %p425_p12 = por %p424_p11, %p423_p5 }
  0x27   : > { %p427_p13 = por %p426_p0, %p425_p12 }
  0x29   : > { %p428_p3 = pnand %p427_p13, %p421_p9 }
  0x2b   : > { %431 = shalt.err (!%p428_p3)
}
  0x2c   : > { %s432_s9 = scalar_lea.vmem %s676_s19, 512  ;;  %s555_s15 = smov [#allocation5]  }
  0x2d   : > { %p433_p4 = scmp.ne.s32.totalorder %s676_s19, %s432_s9  ;;  %s437_s23 = sshll.u32 %s555_s15, 4  ;;  %s438_s23 = int_to_ptr.vmem [resolvable:$false] %s437_s23 }
  0x2e   : > { %s439_s28 = scalar_lea.vmem %s438_s23, 1024  ;;  %p440_p10 = scmp.lt.s32.totalorder %s676_s19, %s438_s23 }
  0x2f   : > { %p435_p8 = pnand %p433_p4, %p419_p7  ;;  %p441_p5 = scmp.lt.s32.totalorder %s439_s28, %s432_s9 }
  0x31   : > { %p436_p1 = pneg %p435_p8  ;;  %p442_p11 = por %p441_p5, %p440_p10 }
  0x33   : > { %p443_p12 = pnand %p442_p11, %p436_p1 }
  0x35   : > { %446 = shalt.err (!%p443_p12)
}
  0x36   : > { %s556_s29 = smov 128   ;;  %s557_s27 = smov 8  }
  0x37   : > { %334 = dma.hbm_to_vmem [thread:$0]  (!%p685_p2), %s681_s24, 512, %s676_s19, %s690_s26, %s556_s29, %s556_s29, %s557_s27  }
  0x38   : > { %p142_p13 = scmp.lt.s32.totalorder %s553_s1, 3  ;;  %p805_p3 = scmp.ge.s32.totalorder %s553_s1, 1 }
  0x3a   : > { %p143_p7 = pnand %p805_p3, %p142_p13 }
  0x3b   : > { %s148_s30 = sand.u32 (!%p143_p7), 1, %s537_s20  }
  0x3c   : > { %146 = sbr.rel (%p143_p7) target bundleno = 100 (0x64), region = 24  ;;  %s318_s11 = sshll.u32 (!%p143_p7), %s148_s30, 5 }
  0x3d   : > { %s149_s12 = scalar_lea.sflag (!%p143_p7), [#allocation6], %s148_s30  ;;  %s152_s13 = scalar_lea.vmem (!%p143_p7), [#allocation5], %s318_s11 }
  0x43   : > { %512 = dma.done.wait (%p648_p6), %s149_s12, 512  }
  0x44   : > { %514 = vsyncadd (%p648_p6), %s149_s12, 4294966784  ;;  %s168_s5 = sand.u32 1, %s525_s17   ;;  %s177_s24 = sld [smem:[#allocation3]]  ;;  %v181_v0 = vlaneseq  ;;  %v190_v6 = vld [vmem:[%s152_s13] sm:$0xff]  ;;  %v191_v8 = vld [vmem:[%s152_s13 + $0x8] sm:$0xff]  ;;  %vm200_vm0 = vcmask 64512  }
  0x45   : > { %s319_s19 = sshll.u32 %s168_s5, 5  ;;  %s179_s26 = sld [smem:[#allocation4]]  ;;  %v192_v9 = vld [vmem:[%s152_s13 + $0x10] sm:$0xff]  ;;  %v193_v10 = vld [vmem:[%s152_s13 + $0x18] sm:$0xff] }
  0x46   : > { %v182_v1 = vshrl.u32 %v181_v0, 7  ;;  %v186_v2 = vand.u32 127, %v181_v0  ;;  %s323_s14 = sshll.u32 %s545_s0, 2  ;;  %s170_s15 = scalar_lea.vmem [#allocation8], %s319_s19 }
  0x47   : > { %s223_s23 = sshll.u32 %s170_s15, 4  ;;  %s739_s12 = scalar_lea.sflag [#allocation7], %s168_s5  ;;  %s730_s23 = int_to_ptr.vmem [resolvable:$true] %s223_s23 }
  0x48   : > { %s447_s13 = scalar_lea.vmem %s730_s23, 512  ;;  %p806_p10 = scmp.ne.s32.totalorder %s802_s8, 0 }
  0x49   : > { %p448_p6 = scmp.ne.s32.totalorder %s730_s23, %s447_s13  ;;  %s558_s19 = smov [#allocation8]  }
  0x4a   : > { %s320_s9 = sshll.u32 %s177_s24, 3 }
  0x4b   : > { %s321_s28 = sshll.u32 %s179_s26, 3  ;;  %v183_v3 = vstv %s320_s9  ;;  %s219_s29 = sadd.s32 %s179_s26, %s177_s24 }
  0x4c   : > { %v184_v4 = vadd.s32 %v183_v3, %v182_v1  ;;  %v187_v5 = vstv %s321_s28  ;;  %s220_s4 = sadd.s32 %s323_s14, %s219_s29  ;;  %p449_p1 = pnand %p448_p6, %p806_p10 }
  0x4d   : > { %v188_v7 = vadd.s32 %v187_v5, %v186_v2  ;;  %s324_s27 = sshll.u32 %s220_s4, 7  ;;  %s451_s24 = sshll.u32 %s558_s19, 4  ;;  %s452_s24 = int_to_ptr.vmem [resolvable:$false] %s451_s24 }
  0x4e   : > { %s735_s11 = scalar_lea.hbm %s798_s3, %s324_s27  ;;  %p450_p2 = pneg %p449_p1 }
  0x4f   : > { %vm189_vm1 = vcmp.le.s32.totalorder %v188_v7, %v184_v4  ;;  %s453_s26 = scalar_lea.vmem %s452_s24, 1024  ;;  %p454_p9 = scmp.lt.s32.totalorder %s730_s23, %s452_s24 }
  0x50   : > { %v196_v11 = vsel %vm189_vm1, %v190_v6, -inf  ;;  %v197_v12 = vsel %vm189_vm1, %v191_v8, -inf  ;;  %v198_v13 = vsel %vm189_vm1, %v192_v9, -inf  ;;  %v199_v14 = vsel %vm189_vm1, %v193_v10, -inf  ;;  %p455_p0 = scmp.lt.s32.totalorder %s453_s26, %s447_s13 }
  0x51   : > { %201 = vst.msk [vmem:[%s170_s15] sm:$0xff] %vm200_vm0, %v196_v11  ;;  %202 = vst.msk [vmem:[%s170_s15 + $0x8] sm:$0xff] %vm200_vm0, %v197_v12 }
  0x52   : > { %203 = vst.msk [vmem:[%s170_s15 + $0x10] sm:$0xff] %vm200_vm0, %v198_v13  ;;  %204 = vst.msk [vmem:[%s170_s15 + $0x18] sm:$0xff] %vm200_vm0, %v199_v14  ;;  %p456_p4 = por %p455_p0, %p454_p9 }
  0x54   : > { %p457_p8 = pnand %p456_p4, %p450_p2 }
  0x56   : > { %460 = shalt.err (!%p457_p8)
}
  0x57   : > { %s461_s5 = scalar_lea.hbm %s735_s11, 512  ;;  %s465_s15 = scalar_lea.hbm %s798_s3, 1024 }
  0x58   : > { %p462_p5 = scmp.ne.s32.totalorder %s735_s11, %s461_s5  ;;  %p466_p13 = scmp.lt.u32.totalorder %s735_s11, %s798_s3 }
  0x59   : > { %p467_p3 = scmp.lt.u32.totalorder %s465_s15, %s461_s5  ;;  %p469_p6 = scmp.lt.u32.totalorder %s461_s5, %s735_s11 }
  0x5a   : > { %p463_p11 = pnand %p462_p5, %p806_p10 }
  0x5b   : > { %p468_p7 = por %p467_p3, %p466_p13 }
  0x5c   : > { %p464_p12 = pneg %p463_p11 }
  0x5d   : > { %p470_p1 = por %p469_p6, %p468_p7 }
  0x5f   : > { %p471_p2 = pnand %p470_p1, %p464_p12 }
  0x61   : > { %474 = shalt.err (!%p471_p2)
}
  0x62   : > { %s559_s4 = smov 128   ;;  %s560_s27 = smov 8  }
  0x63   : > { %329 = dma.vmem_to_hbm [thread:$0]  (%p806_p10), %s730_s23, 512, %s735_s11, %s739_s12, %s559_s4, %s559_s4, %s560_s27  }
  0x64 PF: > { %s238_s0 = sand.u32 1, %s521_s16   ;;  %p807_p9 = scmp.ne.s32.totalorder %s803_s10, 0 }
  0x65   : > { %p808_p0 = scmp.ge.s32.totalorder %s553_s1, 2  ;;  %s239_s30 = scalar_lea.sflag [#allocation7], %s238_s0 }
  0x67   : > { %p336_p4 = pnand %p808_p0, %p807_p9 }
  0x69   : > { %516 = dma.done.wait (!%p336_p4), %s239_s30, 512  }
  0x6a   : > { %518 = vsyncadd (!%p336_p4), %s239_s30, 4294966784  ;;  %s21_s1 = sadd.s32 1, %s553_s1   ;;  %s809_s16 = smov %s525_s17 }
  0x6b   : > { %p18_p8 = scmp.ge.s32.totalorder %s21_s1, 4   ;;  %s810_s17 = smov %s529_s18 }
  0x6c   : > { %s811_s18 = smov %s659_s7  ;;  %s812_s19 = smov %s537_s20 }
  0x6d   : > { %s813_s20 = smov %s541_s21  ;;  %s814_s21 = smov %s656_s6 }
  0x6e   : > { %s815_s0 = smov %s549_s22  ;;  %s816_s22 = smov %s818_s25 }
  0x6f   :  { %20 = sbr.rel (!%p18_p8) target bundleno = 11 (0xb), region = 69 }
  0x76   :  { %244 = vsyncpa [#allocation6], 1 }
  0x77   :  { %246 = vsyncpa [#allocation6 + $0x1], 1 }
  0x78   :  { %247 = vsyncpa [#allocation7], 1 }
  0x79   :  { %249 = vsyncpa [#allocation7 + $0x1], 1 }

</bundles_post_ra>
